<compile_context>
chip_gen: v7x
topology: tpu7x:2x2x1
jax: 0.10.0
libtpu: 0.0.40
codegen_flags: <defaults>
</compile_context>

<pallas_src>
import functools
import math

import jax
import jax.numpy as jnp
from jax.experimental import pallas as pl
from jax.experimental.pallas import tpu as pltpu

_LANES = 128
_VMEM_BLOCK_BYTES = 2 * 1024 * 1024     # per-input per-block budget
_VMEM_LIMIT_BYTES = 40 * 1024 * 1024    # explicit scoped-VMEM limit (safe on v5e/v6e/v7x)
_MAX_SUPER_ROW = 1024                   # max flattened width W = LCM(C, 128)
_ROW_ALIGN = 32                         # tile-row alignment (covers f32/bf16/int8 packing)


def _round_up(x, m):
    return ((x + m - 1) // m) * m


def _fold_to_vregs(x, width):
    """(tb, width) -> (8, width) partial sums with pure VPU adds."""
    tb = x.shape[0]
    return jnp.sum(x.reshape(tb // 8, 8, width), axis=0)


def _lane_dense_kernel(rows, y_ref, t_ref, colmask_ref, seg_ref,
                       loss_out_ref, loss1_out_ref, acc_ref, acc1_ref):
    """Blocks are (tb, W) tiles of the flattened lane-dense [B*C/W, W] view.

    Each W-lane vector row holds W // C consecutive original rows.  `seg_ref` is
    a (W, W) block-diagonal ones matrix (bf16) used to broadcast each original
    row's any(target[1:] > 0) across its C lanes with one MXU matmul.
    `colmask_ref` is a (1, W) f32 row that is 1.0 on the column-0 lane of every
    original row.
    """
    chunk = pl.program_id(0)
    i = pl.program_id(1)
    n_inner = pl.num_programs(1)
    g = chunk * n_inner + i                     # global row-tile index
    tb, width = y_ref.shape

    @pl.when(i == 0)
    def _init():
        acc_ref[...] = jnp.zeros_like(acc_ref)
        acc1_ref[...] = jnp.zeros_like(acc1_ref)

    y = y_ref[...].astype(jnp.float32)
    t = t_ref[...].astype(jnp.float32)
    d = y - t
    se = d * d

    col0 = colmask_ref[...]                     # (1, W), 1.0 at col 0 of each group
    tail = 1.0 - col0                           # (1, W)

    # per-original-row "any(target[1:] > 0)", broadcast across its C lanes.
    ind = (jnp.where(t > 0.0, 1.0, 0.0) * tail).astype(jnp.bfloat16)
    grp = jnp.dot(ind, seg_ref[...], preferred_element_type=jnp.float32)

    c1 = se * col0                              # criterion[:, 0] contribution
    ct = jnp.where(grp > 0.0, se, 0.0) * tail   # w1 * criterion[:, 1:]

    is_full = (g * tb + tb) <= rows

    @pl.when(is_full)
    def _acc_full():
        f1 = _fold_to_vregs(c1, width)
        acc1_ref[...] += f1
        acc_ref[...] += 5.0 * f1 + _fold_to_vregs(ct, width)

    @pl.when(jnp.logical_not(is_full))
    def _acc_partial():
        # ragged tail / clamped-duplicate tile: mask rows past the real data
        row = jax.lax.broadcasted_iota(jnp.int32, (tb, width), 0)
        valid = row < (rows - g * tb)
        f1 = _fold_to_vregs(jnp.where(valid, c1, 0.0), width)
        acc1_ref[...] += f1
        acc_ref[...] += 5.0 * f1 + _fold_to_vregs(jnp.where(valid, ct, 0.0), width)

    @pl.when(i == n_inner - 1)
    def _finalize():
        loss_out_ref[0] = acc_ref[...]
        loss1_out_ref[0] = acc1_ref[...]


def _generic_kernel(rows, y_ref, t_ref, loss_out_ref, loss1_out_ref,
                    acc_ref, acc1_ref):
    """Blocks are (tb, C) row tiles of the original [B, C] arrays."""
    chunk = pl.program_id(0)
    i = pl.program_id(1)
    n_inner = pl.num_programs(1)
    g = chunk * n_inner + i
    tb, ncols = y_ref.shape

    @pl.when(i == 0)
    def _init():
        acc_ref[...] = jnp.zeros_like(acc_ref)
        acc1_ref[...] = jnp.zeros_like(acc1_ref)

    y = y_ref[...].astype(jnp.float32)
    t = t_ref[...].astype(jnp.float32)
    d = y - t
    se = d * d

    col = jax.lax.broadcasted_iota(jnp.int32, (tb, ncols), 1)
    col0 = col == 0
    tail = col >= 1

    # per-row any(target[:, 1:] > 0), broadcast along lanes
    ind = jnp.where(jnp.logical_and(tail, t > 0.0), 1.0, 0.0)
    w1 = jnp.max(ind, axis=1, keepdims=True) > 0.0              # (tb, 1)

    c1 = jnp.where(col0, se, 0.0)
    ct = jnp.where(jnp.logical_and(tail, w1), se, 0.0)

    is_full = (g * tb + tb) <= rows

    @pl.when(is_full)
    def _acc_full():
        f1 = _fold_to_vregs(c1, ncols)
        acc1_ref[...] += f1
        acc_ref[...] += 5.0 * f1 + _fold_to_vregs(ct, ncols)

    @pl.when(jnp.logical_not(is_full))
    def _acc_partial():
        row = jax.lax.broadcasted_iota(jnp.int32, (tb, ncols), 0)
        valid = row < (rows - g * tb)
        f1 = _fold_to_vregs(jnp.where(valid, c1, 0.0), ncols)
        acc1_ref[...] += f1
        acc_ref[...] += 5.0 * f1 + _fold_to_vregs(jnp.where(valid, ct, 0.0), ncols)

    @pl.when(i == n_inner - 1)
    def _finalize():
        loss_out_ref[0] = acc_ref[...]
        loss1_out_ref[0] = acc1_ref[...]


def _choose_tiles(rows, width, itemsize, max_tile_rows):
    """Row-tile size (multiple of 32) + unconditional 2-way chunking."""
    width_padded = _round_up(width, _LANES)
    budget_rows = (_VMEM_BLOCK_BYTES // (width_padded * itemsize)) // _ROW_ALIGN * _ROW_ALIGN
    budget_rows = max(_ROW_ALIGN, budget_rows)
    cap = max(_ROW_ALIGN, (min(max_tile_rows, budget_rows) // _ROW_ALIGN) * _ROW_ALIGN)
    tb = min(cap, _round_up(max(rows, 1), _ROW_ALIGN))
    total_tiles = pl.cdiv(rows, tb)
    # Always 2 "parallel" chunks when there is more than one tile; the extra
    # (duplicated) step of chunk 1 with an odd tile count is clamped in the
    # index_map and fully masked in-kernel.
    num_chunks = 2 if total_tiles >= 2 else 1
    tiles_per_chunk = pl.cdiv(total_tiles, num_chunks)
    return tb, num_chunks, tiles_per_chunk, total_tiles


def loss_fun(output, target, *, max_tile_rows=4096):
    """Returns (mean(loss), mean(loss1)) exactly as the PyTorch module."""
    B, C = target.shape
    assert output.shape == (B, C)
    total = B * C
    itemsize = max(output.dtype.itemsize, target.dtype.itemsize)

    W = (C * _LANES) // math.gcd(C, _LANES)          # LCM(C, 128)
    lane_dense = (C < _LANES) and (W <= _MAX_SUPER_ROW) and (total % W == 0)

    if lane_dense:
        rows, width = total // W, W
        y_v = output.reshape(rows, width)             # free contiguous reshape
        t_v = target.reshape(rows, width)
    else:
        rows, width = B, C
        y_v, t_v = output, target

    tb, num_chunks, tiles_per_chunk, total_tiles = _choose_tiles(
        rows, width, itemsize, max_tile_rows)
    grid = (num_chunks, tiles_per_chunk)

    def data_index_map(c, i):
        # Clamp: with an odd tile count chunk 1 revisits the last tile once; the
        # kernel fully masks that duplicated step.
        return (jnp.minimum(c * tiles_per_chunk + i, total_tiles - 1), 0)

    data_spec = pl.BlockSpec((tb, width), data_index_map)
    part_spec = pl.BlockSpec((1, 8, width), lambda c, i: (c, 0, 0))
    out_shapes = (jax.ShapeDtypeStruct((num_chunks, 8, width), jnp.float32),
                  jax.ShapeDtypeStruct((num_chunks, 8, width), jnp.float32))
    scratch = [pltpu.VMEM((8, width), jnp.float32),
               pltpu.VMEM((8, width), jnp.float32)]

    if lane_dense:
        lane = jnp.arange(W, dtype=jnp.int32)
        colmask = (lane % C == 0).astype(jnp.float32).reshape(1, W)
        gid = lane // C
        seg = (gid[:, None] == gid[None, :]).astype(jnp.bfloat16)  # block-diagonal ones
        kernel = functools.partial(_lane_dense_kernel, rows)
        in_specs = [data_spec, data_spec,
                    pl.BlockSpec((1, W), lambda c, i: (0, 0)),
                    pl.BlockSpec((W, W), lambda c, i: (0, 0))]
        args = (y_v, t_v, colmask, seg)
        flops = 8 * total + 2 * total * W
        extra_bytes = W * 4 + W * W * 2
    else:
        kernel = functools.partial(_generic_kernel, rows)
        in_specs = [data_spec, data_spec]
        args = (y_v, t_v)
        flops = 10 * total
        extra_bytes = 0

    cost = pl.CostEstimate(
        flops=int(flops),
        transcendentals=0,
        bytes_accessed=int(2 * total * itemsize + extra_bytes
                           + 2 * num_chunks * 8 * width * 4))

    loss_part, loss1_part = pl.pallas_call(
        kernel,
        out_shape=out_shapes,
        grid_spec=pltpu.PrefetchScalarGridSpec(
            num_scalar_prefetch=0,
            grid=grid,
            in_specs=in_specs,
            out_specs=(part_spec, part_spec),
            scratch_shapes=scratch,
        ),
        compiler_params=pltpu.CompilerParams(
            dimension_semantics=("parallel", "arbitrary"),
            vmem_limit_bytes=_VMEM_LIMIT_BYTES),
        cost_estimate=cost,
    )(*args)

    inv = 1.0 / float(total)
    mean_loss = jnp.sum(loss_part) * inv
    mean_loss1 = jnp.sum(loss1_part) * inv
    return mean_loss, mean_loss1


def _reference(output, target):
    # Pure-JAX mirror of the PyTorch module (criterion = elementwise MSE).
    o = output.astype(jnp.float32)
    t = target.astype(jnp.float32)
    se = (o - t) ** 2
    loss1 = jnp.zeros_like(se).at[:, 0].set(se[:, 0])
    w1 = jnp.any(t[:, 1:] > 0, axis=1).astype(jnp.float32)[:, None]
    loss = (1.0 - w1) * loss1 + w1 * se
    loss = loss.at[:, 0].multiply(5.0)
    return jnp.mean(loss), jnp.mean(loss1)


def _make_inputs(key, B, C, dtype=jnp.float32):
    k1, k2, k3 = jax.random.split(key, 3)
    output = jax.random.normal(k1, (B, C), dtype=jnp.float32)
    target = jax.random.normal(k2, (B, C), dtype=jnp.float32)
    # force some rows to have an all-nonpositive tail so both w1/w2 branches run
    neg_rows = jax.random.bernoulli(k3, 0.3, (B, 1))
    tail_cols = jnp.arange(C)[None, :] >= 1
    target = jnp.where(neg_rows & tail_cols, -jnp.abs(target), target)
    return output.astype(dtype), target.astype(dtype)


if __name__ == "__main__":
    key = jax.random.PRNGKey(0)
    keys = jax.random.split(key, 5)

    # (B, C, dtype, max_tile_rows) — chosen to exercise every code path:
    cases = [
        (520, 16, jnp.float32, 32),    # lane-dense W=128, odd tile count -> clamped duplicate + ragged tail
        (96, 20, jnp.float32, 4096),   # generalized lane-dense W=640, single partial tile
        (100, 20, jnp.float32, 32),    # generic path (B*C % 640 != 0), 2 chunks, ragged tail
        (64, 160, jnp.float32, 32),    # generic path, C > 128, 2 full chunks
        (512, 16, jnp.bfloat16, 32),   # narrow dtype kept in HBM, cast in-kernel
    ]

    for idx, (B, C, dt, mtr) in enumerate(cases):
        o, t = _make_inputs(keys[idx], B, C, dt)
        got = loss_fun(o, t, max_tile_rows=mtr)
        jax.block_until_ready(got)
        want = _reference(o, t)
        assert jnp.allclose(got[0], want[0], rtol=1e-5, atol=1e-5), (
            "mean_loss mismatch", (B, C, str(dt)), got[0], want[0])
        assert jnp.allclose(got[1], want[1], rtol=1e-5, atol=1e-5), (
            "mean_loss1 mismatch", (B, C, str(dt)), got[1], want[1])

    # TODO(synk): `criterion` is a free global in the reference code; elementwise
    # MSE (nn.MSELoss(reduction='none')) is assumed here.
    print("KERNEL_OK")
</pallas_src>

<mosaic_0001>
module attributes {stable_mosaic.version = 11 : i64} {
  func.func @_lane_dense_kernel(%arg0: i32, %arg1: i32, %arg2: memref<32x128xf32, #tpu.memory_space<vmem>>, %arg3: memref<32x128xf32, #tpu.memory_space<vmem>>, %arg4: memref<1x128xf32, #tpu.memory_space<vmem>>, %arg5: memref<128x128xbf16, #tpu.memory_space<vmem>>, %arg6: memref<1x8x128xf32, #tpu.memory_space<vmem>>, %arg7: memref<1x8x128xf32, #tpu.memory_space<vmem>>, %arg8: memref<8x128xf32, #tpu.memory_space<vmem>>, %arg9: memref<8x128xf32, #tpu.memory_space<vmem>>) attributes {dimension_semantics = [#tpu.dimension_semantics<parallel>, #tpu.dimension_semantics<arbitrary>], iteration_bounds = array<i64: 2, 2>, scalar_prefetch = 0 : i64, scratch_operands = 2 : i64, tpu.core_type = #tpu.core_type<tc>, window_params = [{transform_indices = @transform_0, window_bounds = array<i64: 32, 128>}, {transform_indices = @transform_1, window_bounds = array<i64: 32, 128>}, {pipeline_mode = #tpu.pipeline_mode<synchronous>, transform_indices = @transform_2, window_bounds = array<i64: 1, 128>}, {pipeline_mode = #tpu.pipeline_mode<synchronous>, transform_indices = @transform_3, window_bounds = array<i64: 128, 128>}, {transform_indices = @transform_4, window_bounds = array<i64: 1, 8, 128>}, {transform_indices = @transform_5, window_bounds = array<i64: 1, 8, 128>}]} {
    %c2_i32 = arith.constant 2 : i32
    %0 = arith.muli %arg0, %c2_i32 : i32
    %1 = arith.addi %0, %arg1 : i32
    %c0_i32 = arith.constant 0 : i32
    %2 = arith.cmpi eq, %arg1, %c0_i32 : i32
    %3 = arith.extui %2 : i1 to i32
    %c0_i32_0 = arith.constant 0 : i32
    %4 = arith.cmpi ne, %3, %c0_i32_0 : i32
    scf.if %4 {
      %cst_18 = arith.constant 0.000000e+00 : f32
      %41 = vector.broadcast %cst_18 : f32 to vector<8x128xf32>
      %c0_19 = arith.constant 0 : index
      %c0_20 = arith.constant 0 : index
      %42 = vector.load %arg8[%c0_19, %c0_20] : memref<8x128xf32, #tpu.memory_space<vmem>>, vector<8x128xf32>
      tpu.vector_store %arg8[%c0_19, %c0_20], %41 {strides = array<i32>} : memref<8x128xf32, #tpu.memory_space<vmem>>, vector<8x128xf32>,
      %cst_21 = arith.constant 0.000000e+00 : f32
      %43 = vector.broadcast %cst_21 : f32 to vector<8x128xf32>
      %c0_22 = arith.constant 0 : index
      %c0_23 = arith.constant 0 : index
      %44 = vector.load %arg9[%c0_22, %c0_23] : memref<8x128xf32, #tpu.memory_space<vmem>>, vector<8x128xf32>
      tpu.vector_store %arg9[%c0_22, %c0_23], %43 {strides = array<i32>} : memref<8x128xf32, #tpu.memory_space<vmem>>, vector<8x128xf32>,
    } else {
    }
    %c0 = arith.constant 0 : index
    %c0_1 = arith.constant 0 : index
    %5 = vector.load %arg2[%c0, %c0_1] : memref<32x128xf32, #tpu.memory_space<vmem>>, vector<32x128xf32>
    %c0_2 = arith.constant 0 : index
    %c0_3 = arith.constant 0 : index
    %6 = vector.load %arg3[%c0_2, %c0_3] : memref<32x128xf32, #tpu.memory_space<vmem>>, vector<32x128xf32>
    %7 = arith.subf %5, %6 : vector<32x128xf32>
    %8 = arith.mulf %7, %7 : vector<32x128xf32>
    %c0_4 = arith.constant 0 : index
    %c0_5 = arith.constant 0 : index
    %9 = vector.load %arg4[%c0_4, %c0_5] : memref<1x128xf32, #tpu.memory_space<vmem>>, vector<1x128xf32>
    %cst = arith.constant 1.000000e+00 : f32
    %10 = vector.broadcast %cst : f32 to vector<1x128xf32>
    %11 = arith.subf %10, %9 : vector<1x128xf32>
    %cst_6 = arith.constant 0.000000e+00 : f32
    %12 = vector.broadcast %cst_6 : f32 to vector<32x128xf32>
    %13 = arith.cmpf ogt, %6, %12 : vector<32x128xf32>
    %cst_7 = arith.constant 1.000000e+00 : f32
    %cst_8 = arith.constant 0.000000e+00 : f32
    %14 = vector.broadcast %cst_7 : f32 to vector<32x128xf32>
    %15 = vector.broadcast %cst_8 : f32 to vector<32x128xf32>
    %16 = arith.select %13, %14, %15 : vector<32x128xi1>, vector<32x128xf32>
    %17 = vector.broadcast %11 : vector<1x128xf32> to vector<32x128xf32>
    %18 = arith.mulf %16, %17 : vector<32x128xf32>
    %19 = arith.truncf %18 : vector<32x128xf32> to vector<32x128xbf16>
    %c0_9 = arith.constant 0 : index
    %c0_10 = arith.constant 0 : index
    %20 = vector.load %arg5[%c0_9, %c0_10] : memref<128x128xbf16, #tpu.memory_space<vmem>>, vector<128x128xbf16>
    %cst_11 = arith.constant dense<0.000000e+00> : vector<32x128xf32>
    %21 = tpu.matmul %19, %20, %cst_11 {dimension_numbers = #tpu.dot_dimension_numbers<[1], [0], [0], [1], [0, 0, 1, 1], [], []>} : vector<32x128xbf16>, vector<128x128xbf16>, vector<32x128xf32> -> vector<32x128xf32>
    %22 = vector.broadcast %9 : vector<1x128xf32> to vector<32x128xf32>
    %23 = arith.mulf %8, %22 : vector<32x128xf32>
    %cst_12 = arith.constant 0.000000e+00 : f32
    %24 = vector.broadcast %cst_12 : f32 to vector<32x128xf32>
    %25 = arith.cmpf ogt, %21, %24 : vector<32x128xf32>
    %cst_13 = arith.constant 0.000000e+00 : f32
    %26 = vector.broadcast %cst_13 : f32 to vector<32x128xf32>
    %27 = arith.select %25, %8, %26 : vector<32x128xi1>, vector<32x128xf32>
    %28 = vector.broadcast %11 : vector<1x128xf32> to vector<32x128xf32>
    %29 = arith.mulf %27, %28 : vector<32x128xf32>
    %c32_i32 = arith.constant 32 : i32
    %30 = arith.muli %1, %c32_i32 : i32
    %c32_i32_14 = arith.constant 32 : i32
    %31 = arith.addi %30, %c32_i32_14 : i32
    %c65_i32 = arith.constant 65 : i32
    %32 = arith.cmpi sle, %31, %c65_i32 : i32
    %33 = arith.extui %32 : i1 to i32
    %c0_i32_15 = arith.constant 0 : i32
    %34 = arith.cmpi ne, %33, %c0_i32_15 : i32
    scf.if %34 {
      %41 = vector.shape_cast %23 : vector<32x128xf32> to vector<4x8x128xf32>
      %cst_18 = arith.constant dense<0.000000e+00> : vector<8x128xf32>
      %42 = vector.multi_reduction <add>, %41, %cst_18 [0] : vector<4x8x128xf32> to vector<8x128xf32>
      %c0_19 = arith.constant 0 : index
      %c0_20 = arith.constant 0 : index
      %43 = vector.load %arg9[%c0_19, %c0_20] : memref<8x128xf32, #tpu.memory_space<vmem>>, vector<8x128xf32>
      %44 = arith.addf %43, %42 : vector<8x128xf32>
      %c0_21 = arith.constant 0 : index
      %c0_22 = arith.constant 0 : index
      %45 = vector.load %arg9[%c0_21, %c0_22] : memref<8x128xf32, #tpu.memory_space<vmem>>, vector<8x128xf32>
      tpu.vector_store %arg9[%c0_21, %c0_22], %44 {strides = array<i32>} : memref<8x128xf32, #tpu.memory_space<vmem>>, vector<8x128xf32>,
      %c0_23 = arith.constant 0 : index
      %c0_24 = arith.constant 0 : index
      %46 = vector.load %arg8[%c0_23, %c0_24] : memref<8x128xf32, #tpu.memory_space<vmem>>, vector<8x128xf32>
      %cst_25 = arith.constant 5.000000e+00 : f32
      %47 = vector.broadcast %cst_25 : f32 to vector<8x128xf32>
      %48 = arith.mulf %47, %42 : vector<8x128xf32>
      %49 = vector.shape_cast %29 : vector<32x128xf32> to vector<4x8x128xf32>
      %cst_26 = arith.constant dense<0.000000e+00> : vector<8x128xf32>
      %50 = vector.multi_reduction <add>, %49, %cst_26 [0] : vector<4x8x128xf32> to vector<8x128xf32>
      %51 = arith.addf %48, %50 : vector<8x128xf32>
      %52 = arith.addf %46, %51 : vector<8x128xf32>
      %c0_27 = arith.constant 0 : index
      %c0_28 = arith.constant 0 : index
      %53 = vector.load %arg8[%c0_27, %c0_28] : memref<8x128xf32, #tpu.memory_space<vmem>>, vector<8x128xf32>
      tpu.vector_store %arg8[%c0_27, %c0_28], %52 {strides = array<i32>} : memref<8x128xf32, #tpu.memory_space<vmem>>, vector<8x128xf32>,
    } else {
    }
    %true = arith.constant true
    %35 = arith.xori %32, %true : i1
    %36 = arith.extui %35 : i1 to i32
    %c0_i32_16 = arith.constant 0 : i32
    %37 = arith.cmpi ne, %36, %c0_i32_16 : i32
    scf.if %37 {
      %41 = tpu.iota {dimensions = array<i32: 0>} : vector<32x128xi32>
      %c32_i32_18 = arith.constant 32 : i32
      %42 = arith.muli %1, %c32_i32_18 : i32
      %c65_i32_19 = arith.constant 65 : i32
      %43 = arith.subi %c65_i32_19, %42 : i32
      %44 = vector.broadcast %43 : i32 to vector<32x128xi32>
      %45 = arith.cmpi slt, %41, %44 : vector<32x128xi32>
      %cst_20 = arith.constant 0.000000e+00 : f32
      %46 = vector.broadcast %cst_20 : f32 to vector<32x128xf32>
      %47 = arith.select %45, %23, %46 : vector<32x128xi1>, vector<32x128xf32>
      %48 = vector.shape_cast %47 : vector<32x128xf32> to vector<4x8x128xf32>
      %cst_21 = arith.constant dense<0.000000e+00> : vector<8x128xf32>
      %49 = vector.multi_reduction <add>, %48, %cst_21 [0] : vector<4x8x128xf32> to vector<8x128xf32>
      %c0_22 = arith.constant 0 : index
      %c0_23 = arith.constant 0 : index
      %50 = vector.load %arg9[%c0_22, %c0_23] : memref<8x128xf32, #tpu.memory_space<vmem>>, vector<8x128xf32>
      %51 = arith.addf %50, %49 : vector<8x128xf32>
      %c0_24 = arith.constant 0 : index
      %c0_25 = arith.constant 0 : index
      %52 = vector.load %arg9[%c0_24, %c0_25] : memref<8x128xf32, #tpu.memory_space<vmem>>, vector<8x128xf32>
      tpu.vector_store %arg9[%c0_24, %c0_25], %51 {strides = array<i32>} : memref<8x128xf32, #tpu.memory_space<vmem>>, vector<8x128xf32>,
      %c0_26 = arith.constant 0 : index
      %c0_27 = arith.constant 0 : index
      %53 = vector.load %arg8[%c0_26, %c0_27] : memref<8x128xf32, #tpu.memory_space<vmem>>, vector<8x128xf32>
      %cst_28 = arith.constant 5.000000e+00 : f32
      %54 = vector.broadcast %cst_28 : f32 to vector<8x128xf32>
      %55 = arith.mulf %54, %49 : vector<8x128xf32>
      %cst_29 = arith.constant 0.000000e+00 : f32
      %56 = vector.broadcast %cst_29 : f32 to vector<32x128xf32>
      %57 = arith.select %45, %29, %56 : vector<32x128xi1>, vector<32x128xf32>
      %58 = vector.shape_cast %57 : vector<32x128xf32> to vector<4x8x128xf32>
      %cst_30 = arith.constant dense<0.000000e+00> : vector<8x128xf32>
      %59 = vector.multi_reduction <add>, %58, %cst_30 [0] : vector<4x8x128xf32> to vector<8x128xf32>
      %60 = arith.addf %55, %59 : vector<8x128xf32>
      %61 = arith.addf %53, %60 : vector<8x128xf32>
      %c0_31 = arith.constant 0 : index
      %c0_32 = arith.constant 0 : index
      %62 = vector.load %arg8[%c0_31, %c0_32] : memref<8x128xf32, #tpu.memory_space<vmem>>, vector<8x128xf32>
      tpu.vector_store %arg8[%c0_31, %c0_32], %61 {strides = array<i32>} : memref<8x128xf32, #tpu.memory_space<vmem>>, vector<8x128xf32>,
    } else {
    }
    %c1_i32 = arith.constant 1 : i32
    %38 = arith.cmpi eq, %arg1, %c1_i32 : i32
    %39 = arith.extui %38 : i1 to i32
    %c0_i32_17 = arith.constant 0 : i32
    %40 = arith.cmpi ne, %39, %c0_i32_17 : i32
    scf.if %40 {
      %c0_18 = arith.constant 0 : index
      %c0_19 = arith.constant 0 : index
      %41 = vector.load %arg8[%c0_18, %c0_19] : memref<8x128xf32, #tpu.memory_space<vmem>>, vector<8x128xf32>
      %c0_20 = arith.constant 0 : index
      %c0_21 = arith.constant 0 : index
      %c0_22 = arith.constant 0 : index
      %42 = vector.load %arg6[%c0_20, %c0_21, %c0_22] : memref<1x8x128xf32, #tpu.memory_space<vmem>>, vector<1x8x128xf32>
      %43 = vector.shape_cast %42 : vector<1x8x128xf32> to vector<8x128xf32>
      %44 = vector.shape_cast %41 : vector<8x128xf32> to vector<1x8x128xf32>
      tpu.vector_store %arg6[%c0_20, %c0_21, %c0_22], %44 {strides = array<i32>} : memref<1x8x128xf32, #tpu.memory_space<vmem>>, vector<1x8x128xf32>,
      %c0_23 = arith.constant 0 : index
      %c0_24 = arith.constant 0 : index
      %45 = vector.load %arg9[%c0_23, %c0_24] : memref<8x128xf32, #tpu.memory_space<vmem>>, vector<8x128xf32>
      %c0_25 = arith.constant 0 : index
      %c0_26 = arith.constant 0 : index
      %c0_27 = arith.constant 0 : index
      %46 = vector.load %arg7[%c0_25, %c0_26, %c0_27] : memref<1x8x128xf32, #tpu.memory_space<vmem>>, vector<1x8x128xf32>
      %47 = vector.shape_cast %46 : vector<1x8x128xf32> to vector<8x128xf32>
      %48 = vector.shape_cast %45 : vector<8x128xf32> to vector<1x8x128xf32>
      tpu.vector_store %arg7[%c0_25, %c0_26, %c0_27], %48 {strides = array<i32>} : memref<1x8x128xf32, #tpu.memory_space<vmem>>, vector<1x8x128xf32>,
    } else {
    }
    return
  }
  func.func @transform_0(%arg0: i32, %arg1: i32) -> (i32, i32) {
    %c2_i32 = arith.constant 2 : i32
    %0 = arith.muli %arg0, %c2_i32 : i32
    %1 = arith.addi %0, %arg1 : i32
    %c2_i32_0 = arith.constant 2 : i32
    %2 = arith.minsi %1, %c2_i32_0 : i32
    %c0_i32 = arith.constant 0 : i32
    %c0_i32_1 = arith.constant 0 : i32
    return %2, %c0_i32 : i32, i32
  }
  func.func @transform_1(%arg0: i32, %arg1: i32) -> (i32, i32) {
    %c2_i32 = arith.constant 2 : i32
    %0 = arith.muli %arg0, %c2_i32 : i32
    %1 = arith.addi %0, %arg1 : i32
    %c2_i32_0 = arith.constant 2 : i32
    %2 = arith.minsi %1, %c2_i32_0 : i32
    %c0_i32 = arith.constant 0 : i32
    %c0_i32_1 = arith.constant 0 : i32
    return %2, %c0_i32 : i32, i32
  }
  func.func @transform_2(%arg0: i32, %arg1: i32) -> (i32, i32) {
    %c0_i32 = arith.constant 0 : i32
    %c0_i32_0 = arith.constant 0 : i32
    %c0_i32_1 = arith.constant 0 : i32
    return %c0_i32, %c0_i32_0 : i32, i32
  }
  func.func @transform_3(%arg0: i32, %arg1: i32) -> (i32, i32) {
    %c0_i32 = arith.constant 0 : i32
    %c0_i32_0 = arith.constant 0 : i32
    %c0_i32_1 = arith.constant 0 : i32
    return %c0_i32, %c0_i32_0 : i32, i32
  }
  func.func @transform_4(%arg0: i32, %arg1: i32) -> (i32, i32, i32) {
    %c0_i32 = arith.constant 0 : i32
    %c0_i32_0 = arith.constant 0 : i32
    %c0_i32_1 = arith.constant 0 : i32
    return %arg0, %c0_i32, %c0_i32_0 : i32, i32, i32
  }
  func.func @transform_5(%arg0: i32, %arg1: i32) -> (i32, i32, i32) {
    %c0_i32 = arith.constant 0 : i32
    %c0_i32_0 = arith.constant 0 : i32
    %c0_i32_1 = arith.constant 0 : i32
    return %arg0, %c0_i32, %c0_i32_0 : i32, i32, i32
  }
}

</mosaic_0001>

<bundles_post_ra>
// kernel: tpu_custom_call.1
= control target key start
LH: loop header
LB: loop body
LE: loop exit
PB: predicated region body
PF: predicated region fallthrough
CT: control target
= control target key end

     0   :  { %s1698_s0 = inlined_call_operand.hbm [shape: f32[65,128], index: 0, kind: input, shape index: {}]   ;;  %s1699_s1 = inlined_call_operand.hbm [shape: f32[65,128], index: 1, kind: input, shape index: {}]   ;;  %s1700_s2 = inlined_call_operand.vmem [shape: f32[1,128], index: 2, kind: input, shape index: {}]   ;;  %s1701_s3 = inlined_call_operand.hbm [shape: bf16[128,128], index: 3, kind: input, shape index: {}]   ;;  %s1702_s4 = inlined_call_operand.hbm [shape: f32[2,8,128], index: 4, kind: output, shape index: {0}]   ;;  %s1703_s5 = inlined_call_operand.hbm [shape: f32[2,8,128], index: 5, kind: output, shape index: {1}]  }
   0x1   :  { %1714 = sst [smem:[#allocation26_spill]] %s1698_s0 }
   0x2   :  { %1715 = sst [smem:[#allocation27_spill]] %s1701_s3 }
   0x3   :  { %11 = vsyncpa [#allocation5], 0 }
   0x4   :  { %13 = vsyncpa [#allocation5 + $0x1], 0 }
   0x5   :  { %14 = vsyncpa [#allocation8], 0 }
   0x6   :  { %16 = vsyncpa [#allocation8 + $0x1], 0 }
   0x7   :  { %17 = vsyncpa [#allocation6], 0 }
   0x8   :  { %19 = vsyncpa [#allocation6 + $0x1], 0 }
   0x9   :  { %20 = vsyncpa [#allocation12], 0 }
   0xa   :  { %22 = vsyncpa [#allocation12 + $0x1], 0  ;;  %s1301_s18 = smov 0   ;;  %s1303_s19 = smov 0  }
   0xb   :  { %s1305_s20 = smov 0   ;;  %s1307_s21 = smov 0  }
   0xc   :  { %s1309_s22 = smov 0   ;;  %s1311_s23 = smov 0  }
   0xd   :  { %s1313_s24 = smov 0   ;;  %s1315_s25 = smov 0  }
   0xe   :  { %s1317_s26 = smov 0   ;;  %s1319_s27 = smov 0  }
   0xf   :  { %s1321_s28 = smov 0  }
  0x10 LB: > { %1716 = sst [smem:[#allocation18_spill]] %s1224_s20  ;;  %s1357_s29 = sadd.s32 4294967295, %s1256_s28   ;;  %s1256_s28 = sphi %s1321_s28, %s28_s28   ;;  %s1252_s27 = sphi %s1319_s27, %s1747_s27   ;;  %s1248_s26 = sphi %s1317_s26, %s1746_s26   ;;  %s1244_s25 = sphi %s1315_s25, %s1745_s25   ;;  %s1240_s24 = sphi %s1313_s24, %s1744_s24   ;;  %s1236_s23 = sphi %s1311_s23, %s1752_s23   ;;  %s1232_s22 = sphi %s1309_s22, %s1751_s22   ;;  %s1228_s21 = sphi %s1307_s21, %s1750_s21   ;;  %s1224_s20 = sphi %s1305_s20, %s1742_s20   ;;  %s1220_s19 = sphi %s1303_s19, %s1749_s19   ;;  %s1216_s18 = sphi %s1301_s18, %s1748_s18  }
  0x11   : > { %1717 = sst [smem:[#allocation19_spill]] %s1248_s26  ;;  %s799_s30 = sadd.s32 4294967294, %s1256_s28  }
  0x12   : > { %1718 = sst [smem:[#allocation20_spill]] %s1252_s27  ;;  %s37_s6 = sadd.s32 1, %s1248_s26 }
  0x13   : > { %s40_s7 = sadd.s32 1, %s1252_s27  ;;  %p38_p0 = scmp.ge.s32.totalorder %s37_s6, 2 }
  0x14   : > { %s800_s8 = sshll.u32 %s1252_s27, 1  ;;  %s55_s10 = sadd.s32 1, %s1236_s23 }
  0x15   : > { %s45_s9 = sadd.s32 %s1248_s26, %s800_s8  ;;  %s1754_s6 = smov (%p38_p0, %s37_s6), 0 }
  0x16   : > { %1719 = sst [smem:[#allocation21_spill]] %s1754_s6  ;;  %s1756_s7 = smov (!%p38_p0, %s40_s7), %s1252_s27 }
  0x17   : > { %p46_p1 = scmp.lt.s32.totalorder %s45_s9, 2  ;;  %p62_p2 = scmp.ne.s32.totalorder %s1236_s23, %s1232_s22 }
  0x18   : > { %p42_p3 = scmp.ge.s32.totalorder %s1756_s7, 2  ;;  %p63_p4 = scmp.eq.s32.totalorder %s1256_s28, 0 }
  0x19   : > { %s1758_s9 = smov (!%p46_p1, %s45_s9), 2  ;;  %p68_p6 = scmp.ne.s32.totalorder %s1232_s22, %s1228_s21 }
  0x1a   : > { %s1760_s7 = smov (%p42_p3, %s1756_s7), 0  ;;  %p1375_p5 = por %p63_p4, %p62_p2 }
  0x1b   : > { %1720 = sst [smem:[#allocation22_spill]] %s1760_s7  ;;  %s801_s12 = sshll.u32 %s1760_s7, 1 }
  0x1c   : > { %s1721_s11 = scalar_select %p1375_p5, 1, 0 }
  0x1d   : > { %p1708_p7 = scmp.eq.s32.totalorder %s1357_s29, 0  ;;  %s49_s13 = sadd.s32 %s801_s12, %s1754_s6 }
  0x1e   : > { %s154_s14 = ssub.s32 %s1252_s27, %s1760_s7  ;;  %p50_p8 = scmp.lt.s32.totalorder %s49_s13, 2 }
  0x1f   : > { %p1388_p9 = por %p1708_p7, %p68_p6  ;;  %p155_p10 = scmp.eq.s32.totalorder %s154_s14, 0 }
  0x20   : > { %s157_s16 = sadd.s32 1, %s1224_s20  ;;  %s1762_s13 = smov (!%p50_p8, %s49_s13), 2 }
  0x21   : > { %s1722_s15 = scalar_select %p1388_p9, 1, 0 }
  0x22   : > { %s1394_s17 = scalar_select %p155_p10, %s1224_s20, %s157_s16  }
  0x23   : > { %s52_s21 = ssub.s32 %s1758_s9, %s1762_s13  ;;  %p167_p11 = scmp.ne.s32.totalorder %s1224_s20, %s1220_s19 }
  0x24   : > { %1723 = sst [smem:[#allocation23_spill]] %s1394_s17  ;;  %p53_p12 = scmp.eq.s32.totalorder %s52_s21, 0 }
  0x25   : > { %p168_p13 = scmp.eq.s32.totalorder %s1357_s29, 3  ;;  %p173_p0 = scmp.ne.s32.totalorder %s1220_s19, %s1216_s18 }
  0x26   : > { %p174_p1 = scmp.eq.s32.totalorder %s799_s30, 3  ;;  %p804_p4 = scmp.ge.s32.totalorder %s1256_s28, 1 }
  0x27   : > { %s1405_s8 = scalar_select %p53_p12, %s1236_s23, %s55_s10  }
  0x28   : > { %p1407_p2 = por %p168_p13, %p167_p11  ;;  %p1411_p3 = por %p174_p1, %p173_p0 }
  0x29   : > { %1724 = sst [smem:[#allocation24_spill]] %s1405_s8  ;;  %p207_p6 = scmp.lt.s32.totalorder %s1256_s28, 5 }
  0x2a   : > { %s1725_s12 = scalar_select %p1407_p2, 1, 0 }
  0x2b   : > { %s1726_s14 = scalar_select %p1411_p3, 1, 0 }
  0x2c   : > { %p1417_p8 = pnand %p804_p4, %p207_p6  ;;  %s1258_s16 = smov [#allocation9]  }
  0x2d   : > { %1727 = sst [smem:[#allocation25_spill]] %s1726_s14  ;;  %s222_s21 = sshll.u32 %s1258_s16, 4  ;;  %s223_s21 = int_to_ptr.vmem [resolvable:$true] %s222_s21 }
  0x2e   : > { %s1728_s13 = scalar_select %p1417_p8, 1, 0 }
  0x2f   : > { %p891_p10 = pneg %p1417_p8  ;;  %s1730_s3 = sld [smem:[#allocation27_spill]] }
  0x31   : > { %p1425_p11 = pnand %p891_p10, %p1708_p7 }
  0x33   : > { %p1012_p13 = pneg %p1425_p11 }
  0x35   : > { %s1010_s6 = scalar_lea.hbm %s1730_s3, 1024 }
  0x36   : > { %p1011_p12 = scmp.ne.s32.totalorder %s1730_s3, %s1010_s6  ;;  %p1017_p4 = scmp.lt.u32.totalorder %s1010_s6, %s1730_s3 }
  0x38   : > { %p1013_p0 = pnand %p1012_p13, %p1011_p12 }
  0x3a   : > { %p1014_p1 = pneg %p1013_p0 }
  0x3c   : > { %p1019_p6 = pnand %p1017_p4, %p1014_p1 }
  0x3e   : > { %1022 = shalt.err (!%p1019_p6)
}
  0x3f   : > { %s1023_s17 = scalar_lea.vmem %s223_s21, 1024  ;;  %p1031_p2 = scmp.lt.s32.totalorder %s223_s21, %s223_s21 }
  0x40   : > { %p1024_p10 = scmp.ne.s32.totalorder %s223_s21, %s1023_s17  ;;  %p1032_p9 = scmp.lt.s32.totalorder %s1023_s17, %s1023_s17 }
  0x42   : > { %p1026_p7 = pnand %p1024_p10, %p1012_p13  ;;  %p1033_p8 = por %p1032_p9, %p1031_p2 }
  0x44   : > { %p1027_p3 = pneg %p1026_p7 }
  0x46   : > { %p1034_p5 = pnand %p1033_p8, %p1027_p3 }
  0x48   : > { %1037 = shalt.err (!%p1034_p5)
}
  0x49   : > { %s1259_s26 = smov 64   ;;  %s1260_s27 = smov 4  }
  0x4a   : > { %894 = dma.hbm_to_vmem [thread:$0]  (!%p1425_p11), %s1730_s3, 1024, %s223_s21, [#allocation8], %s1259_s26, %s1259_s26, %s1260_s27  }
  0x4b   : > { %p806_p12 = scmp.ge.s32.totalorder %s1256_s28, 4 }
  0x4c   : > { %p1731_p0 = scmp.ne.s32.totalorder (!%p806_p12), %s1721_s11, 0 }
  0x4d   : > { %232 = sbr.rel (%p806_p12) target bundleno = 161 (0xa1), region = 24 }
  0x54   : > { %235 = sbr.rel (!%p1731_p0) target bundleno = 124 (0x7c), region = 28  ;;  %s236_s6 = sand.u32 (%p1731_p0), 1, %s1236_s23  }
  0x55   : > { %s809_s17 = sshll.u32 (%p1731_p0), %s1758_s9, 2  ;;  %s807_s8 = sshll.u32 (%p1731_p0), %s236_s6, 5 }
  0x56   : > { %s246_s16 = ssub.s32 (%p1731_p0), 9, %s809_s17  ;;  %s1453_s7 = scalar_lea.sflag (%p1731_p0), [#allocation5], %s236_s6 }
  0x57   : > { %p247_p5 = scmp.lt.s32.totalorder (%p1731_p0), %s246_s16, 4  ;;  %s240_s21 = scalar_lea.vmem (%p1731_p0), [#allocation4], %s807_s8 }
  0x5b   : > { %s1764_s16 = smov (!%p247_p5, %s246_s16), 4 }
  0x5c   : > { %s1450_s20 = sshll.u32 %s1764_s16, 7 }
  0x5d   : > { %s251_s30 = ssub.s32 512, %s1450_s20 }
  0x5e   : > { %252 = vsyncadd %s1453_s7, %s251_s30  ;;  %p811_p7 = scmp.ne.s32.totalorder %s1450_s20, 0  ;;  %s849_s26 = sshll.u32 %s1758_s9, 9 }
  0x5f   : > { %s1732_s0 = sld [smem:[#allocation26_spill]]  ;;  %s257_s6 = sshll.u32 %s240_s21, 4  ;;  %s1463_s6 = int_to_ptr.vmem [resolvable:$true] %s257_s6 }
  0x65   : > { %s1461_s17 = scalar_lea.hbm %s1732_s0, %s849_s26  ;;  %s1042_s3 = scalar_lea.hbm %s1732_s0, 1152 }
  0x66   : > { %s1038_s8 = scalar_lea.hbm %s1461_s17, %s1450_s20  ;;  %p1043_p8 = scmp.lt.u32.totalorder %s1461_s17, %s1732_s0 }
  0x67   : > { %p1039_p9 = scmp.ne.s32.totalorder %s1461_s17, %s1038_s8  ;;  %p1044_p11 = scmp.lt.u32.totalorder %s1042_s3, %s1038_s8 }
  0x68   : > { %p1046_p1 = scmp.lt.u32.totalorder %s1038_s8, %s1461_s17 }
  0x69   : > { %p1040_p2 = pnand %p1039_p9, %p811_p7  ;;  %p1045_p13 = por %p1044_p11, %p1043_p8 }
  0x6b   : > { %p1041_p3 = pneg %p1040_p2  ;;  %p1047_p4 = por %p1046_p1, %p1045_p13 }
  0x6d   : > { %p1048_p6 = pnand %p1047_p4, %p1041_p3 }
  0x6f   : > { %1051 = shalt.err (!%p1048_p6)
}
  0x70   : > { %s1052_s21 = scalar_lea.vmem %s1463_s6, %s1450_s20  ;;  %s1261_s26 = smov [#allocation4]  }
  0x71   : > { %p1053_p10 = scmp.ne.s32.totalorder %s1463_s6, %s1052_s21  ;;  %s1056_s10 = sshll.u32 %s1261_s26, 4  ;;  %s1057_s10 = int_to_ptr.vmem [resolvable:$false] %s1056_s10 }
  0x72   : > { %s1058_s14 = scalar_lea.vmem %s1057_s10, 1024  ;;  %p1059_p5 = scmp.lt.s32.totalorder %s1463_s6, %s1057_s10 }
  0x73   : > { %p1054_p12 = pnand %p1053_p10, %p811_p7  ;;  %p1060_p9 = scmp.lt.s32.totalorder %s1058_s14, %s1052_s21 }
  0x75   : > { %p1055_p0 = pneg %p1054_p12  ;;  %p1061_p2 = por %p1060_p9, %p1059_p5 }
  0x77   : > { %p1062_p8 = pnand %p1061_p2, %p1055_p0 }
  0x79   : > { %1065 = shalt.err (!%p1062_p8)
}
  0x7a   : > { %s1262_s3 = smov 128   ;;  %s1263_s8 = smov 8  }
  0x7b   : > { %263 = dma.hbm_to_vmem [thread:$0]  (%p811_p7), %s1461_s17, %s1450_s20, %s1463_s6, %s1453_s7, %s1262_s3, %s1262_s3, %s1263_s8  }
  0x7c PF: > { %p1733_p3 = scmp.ne.s32.totalorder %s1721_s11, 0 }
  0x7d   : > { %s267_s16 = sand.u32 (%p1733_p3), 1, %s1256_s28   ;;  %s269_s30 = sand.u32 (%p1733_p3), 1, %s1236_s23  }
  0x7e   : > { %266 = sbr.rel (!%p1733_p3) target bundleno = 161 (0xa1), region = 32  ;;  %s815_s27 = sshll.u32 (%p1733_p3), %s269_s30, 5 }
  0x7f   : > { %s817_s21 = sshll.u32 (%p1733_p3), %s1758_s9, 2  ;;  %s1498_s0 = scalar_lea.sflag (%p1733_p3), [#allocation8], %s267_s16 }
  0x80   : > { %s277_s26 = ssub.s32 (%p1733_p3), 9, %s817_s21  ;;  %s271_s20 = scalar_lea.vmem (%p1733_p3), [#allocation7], %s815_s27 }
  0x81   : > { %p278_p11 = scmp.lt.s32.totalorder (%p1733_p3), %s277_s26, 4 }
  0x85   : > { %s1766_s26 = smov (!%p278_p11, %s277_s26), 4 }
  0x86   : > { %s1495_s10 = sshll.u32 %s1766_s26, 7 }
  0x87   : > { %s282_s14 = ssub.s32 512, %s1495_s10 }
  0x88   : > { %283 = vsyncadd %s1498_s0, %s282_s14  ;;  %p819_p7 = scmp.ne.s32.totalorder %s1495_s10, 0  ;;  %s850_s11 = sshll.u32 %s1758_s9, 9 }
  0x89   : > { %s1506_s6 = scalar_lea.hbm %s1699_s1, %s850_s11  ;;  %s288_s3 = sshll.u32 %s271_s20, 4  ;;  %s1508_s3 = int_to_ptr.vmem [resolvable:$true] %s288_s3 }
  0x8a   : > { %s1066_s8 = scalar_lea.hbm %s1506_s6, %s1495_s10  ;;  %s1070_s9 = scalar_lea.hbm %s1699_s1, 1152 }
  0x8b   : > { %p1067_p13 = scmp.ne.s32.totalorder %s1506_s6, %s1066_s8  ;;  %p1071_p6 = scmp.lt.u32.totalorder %s1506_s6, %s1699_s1 }
  0x8c   : > { %p1072_p10 = scmp.lt.u32.totalorder %s1070_s9, %s1066_s8  ;;  %p1074_p0 = scmp.lt.u32.totalorder %s1066_s8, %s1506_s6 }
  0x8d   : > { %p1068_p1 = pnand %p1067_p13, %p819_p7 }
  0x8e   : > { %p1073_p12 = por %p1072_p10, %p1071_p6 }
  0x8f   : > { %p1069_p4 = pneg %p1068_p1 }
  0x90   : > { %p1075_p5 = por %p1074_p0, %p1073_p12 }
  0x92   : > { %p1076_p9 = pnand %p1075_p5, %p1069_p4 }
  0x94   : > { %1079 = shalt.err (!%p1076_p9)
}
  0x95   : > { %s1080_s26 = scalar_lea.vmem %s1508_s3, %s1495_s10  ;;  %s1264_s14 = smov [#allocation7]  }
  0x96   : > { %p1081_p2 = scmp.ne.s32.totalorder %s1508_s3, %s1080_s26  ;;  %s1084_s20 = sshll.u32 %s1264_s14, 4  ;;  %s1085_s20 = int_to_ptr.vmem [resolvable:$false] %s1084_s20 }
  0x97   : > { %s1086_s11 = scalar_lea.vmem %s1085_s20, 1024  ;;  %p1087_p11 = scmp.lt.s32.totalorder %s1508_s3, %s1085_s20 }
  0x98   : > { %p1082_p8 = pnand %p1081_p2, %p819_p7  ;;  %p1088_p13 = scmp.lt.s32.totalorder %s1086_s11, %s1080_s26 }
  0x9a   : > { %p1083_p3 = pneg %p1082_p8  ;;  %p1089_p1 = por %p1088_p13, %p1087_p11 }
  0x9c   : > { %p1090_p6 = pnand %p1089_p1, %p1083_p3 }
  0x9e   : > { %1093 = shalt.err (!%p1090_p6)
}
  0x9f   : > { %s1265_s7 = smov 128   ;;  %s1266_s17 = smov 8  }
  0xa0   : > { %294 = dma.hbm_to_vmem [thread:$0]  (%p819_p7), %s1506_s6, %s1495_s10, %s1508_s3, %s1498_s0, %s1265_s7, %s1265_s7, %s1266_s17  }
  0xa1 PF: > { %p1734_p4 = scmp.ne.s32.totalorder %s1728_s13, 0 }
  0xa2   : > { %s302_s8 = sand.u32 (!%p1734_p4), 1, %s1232_s22   ;;  %p1735_p10 = scmp.ne.s32.totalorder (!%p1734_p4), %s1722_s15, 0 }
  0xa3   : > { %300 = sbr.rel (%p1734_p4) target bundleno = 528 (0x210), region = 36  ;;  %s824_s16 = sshll.u32 (!%p1734_p4), %s302_s8, 5 }
  0xa4   : > { %s303_s30 = scalar_lea.sflag (!%p1734_p4), [#allocation5], %s302_s8  ;;  %s1538_s9 = scalar_lea.vmem (!%p1734_p4), [#allocation4], %s824_s16 }
  0xaa   : > { %1195 = dma.done.wait (%p1735_p10), %s303_s30, 512  }
  0xab   : > { %1197 = vsyncadd (%p1735_p10), %s303_s30, 4294966784  ;;  %s311_s0 = sand.u32 1, %s1357_s29   ;;  %s1545_s6 = scalar_lea.vmem [#allocation7], %s824_s16 }
  0xac   : > { %s312_s10 = scalar_lea.sflag [#allocation8], %s311_s0 }
  0xad   : > { %1199 = dma.done.wait (%p1735_p10), %s312_s10, 512  }
  0xae   : > { %1201 = vsyncadd (%p1735_p10), %s312_s10, 4294966784  ;;  %p1736_p7 = scmp.eq.s32.totalorder %s1357_s29, 0 }
  0xb0   : > { %1203 = dma.done.wait (%p1736_p7), [#allocation8], 1024   ;;  %p1737_p12 = pmov %p1736_p7 }
  0xb1   : > { %s1556_s13 = sand.u32 1, %s1220_s19   ;;  %s829_s3 = sshll.u32 %s1244_s25, 1 }
  0xb2   : > { %1205 = vsyncadd (%p1737_p12), [#allocation8], 4294966272  ;;  %s827_s27 = sshll.u32 %s1556_s13, 3  ;;  %s1561_s21 = sadd.s32 %s1240_s24, %s829_s3 }
  0xb3   : > { %s1563_s26 = scalar_lea.vmem [#allocation10], %s827_s27  ;;  %s1565_s15 = scalar_lea.vmem [#allocation11], %s827_s27 }
  0xb4   : > { %p830_p0 = scmp.ne.s32.totalorder %s1240_s24, 0 }
  0xb5   : > { %v1267_v0 = vmov (!%p830_p0), 0.0  }
  0xb6   : > { %380 = sbr.rel (%p830_p0) target bundleno = 189 (0xbd), region = 52  ;;  %381 = vst [vmem:[#allocation2] sm:$0xff] (!%p830_p0), %v1267_v0  ;;  %382 = vst [vmem:[#allocation3] sm:$0xff] (!%p830_p0), %v1267_v0 }
  0xbd PF: > { %v1002_v1 = vld [vmem:[#allocation9] sm:$0xff]   ;;  %v410_v2 = vlaneseq  ;;  %v1003_v3 = vld [vmem:[#allocation9 + $0x8] sm:$0xff]   ;;  %v1004_v5 = vld [vmem:[#allocation9 + $0x10] sm:$0xff]   ;;  %v1268_v12 = vmov 0.0   ;;  %s839_s20 = sshll.u32 %s1561_s21, 5 }
  0xbe   : > { %861 = vmatprep.subr.bf16.mxu0 %v1002_v1  ;;  %v1005_v6 = vld [vmem:[#allocation9 + $0x18] sm:$0xff]   ;;  %v387_v8 = vld [vmem:[%s1545_s6] sm:$0xff]  ;;  %v388_v9 = vld [vmem:[%s1545_s6 + $0x8] sm:$0xff]  ;;  %s1591_s11 = sadd.s32 32, %s839_s20 }
  0xbf   : > { %862 = vmatpush3.bf16.msra.mxu0 %v1002_v1  ;;  %v1568_v4 = vshrl.u32 %v410_v2, 7  ;;  %v399_v10 = vld [vmem:[%s1700_s2] sm:$0x1]  ;;  %vm401_vm0 = vcmp.gt.f32.partialorder %v387_v8, 0.0  ;;  %vm402_vm1 = vcmp.gt.f32.partialorder %v388_v9, 0.0  ;;  %v1006_v16 = vld [vmem:[#allocation9 + $0x20] sm:$0xff]  }
  0xc0   : > { %863 = vmatprep.subr.bf16.mxu0 %v1003_v3  ;;  %v400_v11 = vsub.f32 1.0, %v399_v10  ;;  %v405_v13 = vsel %vm401_vm0, 1.0, %v1268_v12  ;;  %v406_v14 = vsel %vm402_vm1, 1.0, %v1268_v12  ;;  %v1007_v20 = vld [vmem:[#allocation9 + $0x28] sm:$0xff]   ;;  %v389_v21 = vld [vmem:[%s1545_s6 + $0x10] sm:$0xff]  ;;  %v390_v22 = vld [vmem:[%s1545_s6 + $0x18] sm:$0xff] }
  0xc1   : > { %v412_v7 = vsub.s32 0, %v1568_v4  ;;  %v1008_v23 = vld [vmem:[#allocation9 + $0x30] sm:$0xff]   ;;  %vm403_vm2 = vcmp.gt.f32.partialorder %v389_v21, 0.0  ;;  %vm404_vm3 = vcmp.gt.f32.partialorder %v390_v22, 0.0  ;;  %v1009_v26 = vld [vmem:[#allocation9 + $0x38] sm:$0xff]   ;;  %v383_v32 = vld [vmem:[%s1538_s9] sm:$0xff] }
  0xc2   : > { %v407_v24 = vsel %vm403_vm2, 1.0, %v1268_v12  ;;  %v408_v25 = vsel %vm404_vm3, 1.0, %v1268_v12  ;;  %v385_v30 = vld [vmem:[%s1538_s9 + $0x10] sm:$0xff]  ;;  %v391_v33 = vsub.f32 %v383_v32, %v387_v8  ;;  %v386_v34 = vld [vmem:[%s1538_s9 + $0x18] sm:$0xff]  ;;  %v384_v38 = vld [vmem:[%s1538_s9 + $0x8] sm:$0xff]  ;;  %p840_p5 = scmp.gt.s32.totalorder %s1591_s11, 65 }
  0xc3   : > { %864 = vmatpush3.bf16.msra.mxu0 %v1003_v3  ;;  %v1576_v15 = vrot.slane %v400_v11, %v412_v7  ;;  %v393_v31 = vsub.f32 %v385_v30, %v389_v21  ;;  %v538_v36 = vrot.slane %v399_v10, %v412_v7  ;;  %v394_v37 = vsub.f32 %v386_v34, %v390_v22  ;;  %v565_v63 = vld [vmem:[#allocation3] sm:$0xff] (!%p840_p5) }
  0xc4   : > { %865 = vmatprep.subr.bf16.mxu0 %v1004_v5  ;;  %v395_v39 = vmul.f32 %v391_v33, %v391_v33  ;;  %v392_v40 = vsub.f32 %v384_v38, %v388_v9 }
  0xc5   : > { %v415_v17 = vmul.f32 %v1576_v15, %v405_v13  ;;  %v416_v18 = vmul.f32 %v1576_v15, %v406_v14  ;;  %v417_v27 = vmul.f32 %v1576_v15, %v407_v24  ;;  %v418_v28 = vmul.f32 %v1576_v15, %v408_v25 }
  0xc6   : > { %v397_v35 = vmul.f32 %v393_v31, %v393_v31  ;;  %v398_v42 = vmul.f32 %v394_v37, %v394_v37  ;;  %v540_v43 = vmul.f32 %v538_v36, %v395_v39  ;;  %v396_v44 = vmul.f32 %v392_v40, %v392_v40 }
  0xc7   : > { %866 = vmatpush3.bf16.msra.mxu0 %v1004_v5  ;;  %v419_v19 = vpack.c.bf16 %v416_v18, %v415_v17  ;;  %v420_v29 = vpack.c.bf16 %v418_v28, %v417_v27  ;;  %v568_v5 = vld [vmem:[#allocation2] sm:$0xff] (!%p840_p5) }
  0xc8   : > { %867 = vmatprep.subr.bf16.mxu0 %v1005_v6  ;;  %v542_v41 = vmul.f32 %v538_v36, %v397_v35  ;;  %v543_v45 = vmul.f32 %v538_v36, %v398_v42  ;;  %v541_v46 = vmul.f32 %v538_v36, %v396_v44 }
  0xc9   : > { %877 = vmatprep.mubr.bf16.mxu0 %v419_v19 }
  0xca   : > { %v562_v59 = vadd.f32 (!%p840_p5), %v541_v46, %v540_v43 }
  0xcb   : > { %868 = vmatpush3.bf16.msra.mxu0 %v1005_v6 }
  0xcc   : > { %869 = vmatprep.subr.bf16.mxu0 %v1006_v16  ;;  %v563_v61 = vadd.f32 (!%p840_p5), %v562_v59, %v542_v41 }
  0xce   : > { %v564_v0 = vadd.f32 (!%p840_p5), %v563_v61, %v543_v45 }
  0xcf   : > { %870 = vmatpush3.bf16.msra.mxu0 %v1006_v16 }
  0xd0   : > { %871 = vmatprep.subr.bf16.mxu0 %v1007_v20  ;;  %v566_v2 = vadd.f32 (!%p840_p5), %v565_v63, %v564_v0  ;;  %v569_v3 = vmul.f32 (!%p840_p5), 5.0, %v564_v0 }
  0xd2   : > { %567 = vst [vmem:[#allocation3] sm:$0xff] (!%p840_p5), %v566_v2 }
  0xd3   : > { %872 = vmatpush3.bf16.msra.mxu0 %v1007_v20 }
  0xd4   : > { %873 = vmatprep.subr.bf16.mxu0 %v1008_v23 }
  0xd7   : > { %874 = vmatpush3.bf16.msra.mxu0 %v1008_v23 }
  0xd8   : > { %875 = vmatprep.subr.bf16.mxu0 %v1009_v26 }
  0xdb   : > { %876 = vmatpush3.bf16.msra.mxu0 %v1009_v26 }
  0xde   : > { %878 = vmatmul.mubr.bf16.vlgmr.msra.gmra.mrb[0].mxu0 %v420_v29 }
 0x1b1   : > { %v879_v47 = vpop.f32.mrb[0].mxu0  ;;  %561 = sbr.rel (%p840_p5) target bundleno = 452 (0x1c4), region = 56 }
 0x1b2   : > { %vm546_vm4 = vcmp.gt.f32.partialorder %v879_v47, 0.0  ;;  %v519_v48 = vpop.f32.mrb[1].mxu0 }
 0x1b3   : > { %v550_v49 = vsel %vm546_vm4, %v397_v35, 0.0  ;;  %vm544_vm5 = vcmp.gt.f32.partialorder %v519_v48, 0.0  ;;  %v880_v50 = vpop.f32.mrb[2].mxu0 }
 0x1b4   : > { %v554_v51 = vmul.f32 %v550_v49, %v1576_v15  ;;  %v548_v52 = vsel %vm544_vm5, %v395_v39, 0.0  ;;  %vm547_vm6 = vcmp.gt.f32.partialorder %v880_v50, 0.0  ;;  %v522_v53 = vpop.f32.mrb[3].mxu0 }
 0x1b5   : > { %v552_v54 = vmul.f32 %v548_v52, %v1576_v15  ;;  %v551_v55 = vsel %vm547_vm6, %v398_v42, 0.0  ;;  %vm545_vm7 = vcmp.gt.f32.partialorder %v522_v53, 0.0 }
 0x1b6   : > { %v555_v56 = vmul.f32 %v551_v55, %v1576_v15  ;;  %v549_v57 = vsel %vm545_vm7, %v396_v44, 0.0 }
 0x1b7   : > { %v553_v58 = vmul.f32 %v549_v57, %v1576_v15 }
 0x1b9   : > { %v570_v60 = vadd.f32 %v553_v58, %v552_v54 }
 0x1bb   : > { %v571_v62 = vadd.f32 %v570_v60, %v554_v51 }
 0x1bd   : > { %v572_v1 = vadd.f32 %v571_v62, %v555_v56 }
 0x1bf   : > { %v573_v6 = vadd.f32 %v572_v1, %v569_v3 }
 0x1c1   : > { %v574_v7 = vadd.f32 %v573_v6, %v568_v5 }
 0x1c3   : > { %575 = vst [vmem:[#allocation2] sm:$0xff] %v574_v7 }
 0x1c4 PF: > { %p841_p9 = scmp.le.s32.totalorder %s1591_s11, 65 }
 0x1c5   : > { %v582_v8 = vadd.s32 (!%p841_p9), 8, %v1568_v4  ;;  %v583_v9 = vadd.s32 (!%p841_p9), 16, %v1568_v4  ;;  %v584_v10 = vadd.s32 (!%p841_p9), 24, %v1568_v4  ;;  %s585_s7 = ssub.s32 (!%p841_p9), 65, %s839_s20  ;;  %v598_v23 = vld [vmem:[#allocation3] sm:$0xff] (!%p841_p9) }
 0x1c6   : > { %579 = sbr.rel (%p841_p9) target bundleno = 470 (0x1d6), region = 60  ;;  %v586_v11 = vstv (!%p841_p9), %s585_s7 }
 0x1c7   : > { %vm587_vm8 = vcmp.lt.s32.totalorder (!%p841_p9), %v1568_v4, %v586_v11  ;;  %vm588_vm9 = vcmp.lt.s32.totalorder (!%p841_p9), %v582_v8, %v586_v11  ;;  %vm589_vm10 = vcmp.lt.s32.totalorder (!%p841_p9), %v583_v9, %v586_v11  ;;  %vm590_vm11 = vcmp.lt.s32.totalorder (!%p841_p9), %v584_v10, %v586_v11 }
 0x1c8   : > { %v591_v12 = vsel (!%p841_p9), %vm587_vm8, %v540_v43, 0.0  ;;  %v592_v13 = vsel (!%p841_p9), %vm588_vm9, %v541_v46, 0.0  ;;  %v593_v14 = vsel (!%p841_p9), %vm589_vm10, %v542_v41, 0.0  ;;  %v603_v16 = vsel (!%p841_p9), %vm587_vm8, %v552_v54, 0.0 }
 0x1c9   : > { %v595_v15 = vadd.f32 (!%p841_p9), %v592_v13, %v591_v12  ;;  %v604_v17 = vsel (!%p841_p9), %vm588_vm9, %v553_v58, 0.0  ;;  %v605_v18 = vsel (!%p841_p9), %vm589_vm10, %v554_v51, 0.0  ;;  %v594_v19 = vsel (!%p841_p9), %vm590_vm11, %v543_v45, 0.0 }
 0x1ca   : > { %v607_v20 = vadd.f32 (!%p841_p9), %v604_v17, %v603_v16  ;;  %v606_v22 = vsel (!%p841_p9), %vm590_vm11, %v555_v56, 0.0  ;;  %v601_v28 = vld [vmem:[#allocation2] sm:$0xff] (!%p841_p9) }
 0x1cb   : > { %v596_v21 = vadd.f32 (!%p841_p9), %v595_v15, %v593_v14 }
 0x1cc   : > { %v608_v24 = vadd.f32 (!%p841_p9), %v607_v20, %v605_v18 }
 0x1cd   : > { %v597_v25 = vadd.f32 %v596_v21, %v594_v19 }
 0x1ce   : > { %v609_v26 = vadd.f32 %v608_v24, %v606_v22 }
 0x1cf   : > { %v599_v27 = vadd.f32 %v598_v23, %v597_v25  ;;  %v602_v4 = vmul.f32 5.0, %v597_v25 }
 0x1d1   : > { %600 = vst [vmem:[#allocation3] sm:$0xff] %v599_v27  ;;  %v610_v29 = vadd.f32 %v609_v26, %v602_v4 }
 0x1d3   : > { %v611_v30 = vadd.f32 %v610_v29, %v601_v28 }
 0x1d5   : > { %612 = vst [vmem:[#allocation2] sm:$0xff] %v611_v30 }
 0x1d6 PF: > { %p842_p2 = scmp.ne.s32.totalorder %s1240_s24, 1 }
 0x1d8   : > { %616 = sbr.rel (%p842_p2) target bundleno = 479 (0x1df), region = 64  ;;  %v619_v32 = vld [vmem:[#allocation3] sm:$0xff] (!%p842_p2) }
 0x1d9   : > { %620 = vst [vmem:[%s1565_s15] sm:$0xff] (!%p842_p2), %v619_v32 }
 0x1dc   : > { %v617_v31 = vld [vmem:[#allocation2] sm:$0xff] (!%p842_p2) }
 0x1dd   : > { %618 = vst [vmem:[%s1563_s26] sm:$0xff] (!%p842_p2), %v617_v31 }
 0x1df PF: > { %s845_s17 = sshll.u32 %s1244_s25, 7  ;;  %s640_s24 = sshll.u32 %s1563_s26, 4  ;;  %s641_s24 = int_to_ptr.vmem [resolvable:$true] %s640_s24 }
 0x1e0   : > { %s1614_s30 = scalar_lea.hbm %s1702_s4, %s845_s17  ;;  %s622_s9 = scalar_lea.sflag [#allocation6], %s1556_s13 }
 0x1e1   : > { %s1094_s0 = scalar_lea.vmem %s641_s24, 128  ;;  %p1738_p3 = scmp.ne.s32.totalorder %s1725_s12, 0 }
 0x1e2   : > { %p1095_p8 = scmp.ne.s32.totalorder %s641_s24, %s1094_s0  ;;  %s1269_s10 = smov [#allocation10]  }
 0x1e3   : > { %s1098_s6 = sshll.u32 %s1269_s10, 4  ;;  %s1099_s6 = int_to_ptr.vmem [resolvable:$false] %s1098_s6 }
 0x1e4   : > { %p1096_p11 = pnand %p1095_p8, %p1738_p3  ;;  %s1100_s3 = scalar_lea.vmem %s1099_s6, 256 }
 0x1e5   : > { %p1101_p1 = scmp.lt.s32.totalorder %s641_s24, %s1099_s6  ;;  %p1102_p6 = scmp.lt.s32.totalorder %s1100_s3, %s1094_s0 }
 0x1e6   : > { %p1097_p13 = pneg %p1096_p11 }
 0x1e7   : > { %p1103_p4 = por %p1102_p6, %p1101_p1 }
 0x1e9   : > { %p1104_p10 = pnand %p1103_p4, %p1097_p13 }
 0x1eb   : > { %1107 = shalt.err (!%p1104_p10)
}
 0x1ec   : > { %s1108_s27 = scalar_lea.hbm %s1614_s30, 128  ;;  %s1112_s29 = scalar_lea.hbm %s1702_s4, 256 }
 0x1ed   : > { %p1109_p7 = scmp.ne.s32.totalorder %s1614_s30, %s1108_s27  ;;  %p1113_p5 = scmp.lt.u32.totalorder %s1614_s30, %s1702_s4 }
 0x1ee   : > { %p1114_p9 = scmp.lt.u32.totalorder %s1112_s29, %s1108_s27  ;;  %p1116_p8 = scmp.lt.u32.totalorder %s1108_s27, %s1614_s30 }
 0x1ef   : > { %p1110_p12 = pnand %p1109_p7, %p1738_p3 }
 0x1f0   : > { %p1115_p2 = por %p1114_p9, %p1113_p5 }
 0x1f1   : > { %p1111_p0 = pneg %p1110_p12 }
 0x1f2   : > { %p1117_p11 = por %p1116_p8, %p1115_p2 }
 0x1f4   : > { %p1118_p13 = pnand %p1117_p11, %p1111_p0 }
 0x1f6   : > { %1121 = shalt.err (!%p1118_p13)
}
 0x1f7   : > { %887 = dma.vmem_to_hbm [thread:$0]  (%p1738_p3), %s641_s24, 128, %s1614_s30, %s622_s9  }
 0x1f8   : > { %s1640_s8 = scalar_lea.hbm %s1703_s5, %s845_s17  ;;  %s653_s16 = sshll.u32 %s1565_s15, 4  ;;  %s654_s16 = int_to_ptr.vmem [resolvable:$true] %s653_s16 }
 0x1f9   : > { %s627_s0 = scalar_lea.sflag [#allocation12], %s1556_s13  ;;  %s1122_s10 = scalar_lea.vmem %s654_s16, 128 }
 0x1fa   : > { %p1123_p1 = scmp.ne.s32.totalorder %s654_s16, %s1122_s10  ;;  %s1270_s6 = smov [#allocation11]  }
 0x1fb   : > { %s1126_s3 = sshll.u32 %s1270_s6, 4  ;;  %s1127_s3 = int_to_ptr.vmem [resolvable:$false] %s1126_s3 }
 0x1fc   : > { %p1124_p6 = pnand %p1123_p1, %p1738_p3  ;;  %s1128_s27 = scalar_lea.vmem %s1127_s3, 256 }
 0x1fd   : > { %p1129_p10 = scmp.lt.s32.totalorder %s654_s16, %s1127_s3  ;;  %p1130_p7 = scmp.lt.s32.totalorder %s1128_s27, %s1122_s10 }
 0x1fe   : > { %p1125_p4 = pneg %p1124_p6 }
 0x1ff   : > { %p1131_p12 = por %p1130_p7, %p1129_p10 }
 0x201   : > { %p1132_p0 = pnand %p1131_p12, %p1125_p4 }
 0x203   : > { %1135 = shalt.err (!%p1132_p0)
}
 0x204   : > { %s1136_s25 = scalar_lea.hbm %s1640_s8, 128  ;;  %s1140_s17 = scalar_lea.hbm %s1703_s5, 256 }
 0x205   : > { %p1137_p5 = scmp.ne.s32.totalorder %s1640_s8, %s1136_s25  ;;  %p1141_p8 = scmp.lt.u32.totalorder %s1640_s8, %s1703_s5 }
 0x206   : > { %p1142_p11 = scmp.lt.u32.totalorder %s1140_s17, %s1136_s25  ;;  %p1144_p1 = scmp.lt.u32.totalorder %s1136_s25, %s1640_s8 }
 0x207   : > { %p1138_p9 = pnand %p1137_p5, %p1738_p3 }
 0x208   : > { %p1143_p13 = por %p1142_p11, %p1141_p8 }
 0x209   : > { %p1139_p2 = pneg %p1138_p9 }
 0x20a   : > { %p1145_p6 = por %p1144_p1, %p1143_p13 }
 0x20c   : > { %p1146_p4 = pnand %p1145_p6, %p1139_p2 }
 0x20e   : > { %1149 = shalt.err (!%p1146_p4)
}
 0x20f   : > { %888 = dma.vmem_to_hbm [thread:$0]  (%p1738_p3), %s654_s16, 128, %s1640_s8, %s627_s0  }
 0x210 PF: > { %s1739_s9 = sld [smem:[#allocation25_spill]]  ;;  %p904_p10 = scmp.ge.s32.totalorder %s1256_s28, 2 }
 0x211   : > { %s665_s21 = sand.u32 1, %s1216_s18  }
 0x212   : > { %s666_s26 = scalar_lea.sflag [#allocation6], %s665_s21 }
 0x216   : > { %p1740_p7 = scmp.ne.s32.totalorder %s1739_s9, 0 }
 0x218   : > { %p896_p12 = pnand %p904_p10, %p1740_p7 }
 0x21a   : > { %1207 = dma.done.wait (!%p896_p12), %s666_s26, 128  }
 0x21b   : > { %1209 = vsyncadd (!%p896_p12), %s666_s26, 4294967168  ;;  %s675_s29 = scalar_lea.sflag [#allocation12], %s665_s21 }
 0x21c   : > { %1211 = dma.done.wait (!%p896_p12), %s675_s29, 128  }
 0x21d   : > { %1213 = vsyncadd (!%p896_p12), %s675_s29, 4294967168  ;;  %s28_s28 = sadd.s32 1, %s1256_s28   ;;  %s1741_s12 = sld [smem:[#allocation18_spill]] }
 0x21e   : > { %p25_p0 = scmp.ge.s32.totalorder %s28_s28, 6   ;;  %s1742_s20 = sld [smem:[#allocation23_spill]] }
 0x21f   : > { %s1743_s14 = sld [smem:[#allocation24_spill]]  ;;  %s1744_s24 = sld [smem:[#allocation19_spill]] }
 0x220   : > { %s1745_s25 = sld [smem:[#allocation20_spill]]  ;;  %s1746_s26 = sld [smem:[#allocation21_spill]] }
 0x221   : > { %s1747_s27 = sld [smem:[#allocation22_spill]]  ;;  %s1748_s18 = smov %s1220_s19 }
 0x222   : > { %s1750_s21 = smov %s1232_s22  ;;  %s1751_s22 = smov %s1236_s23 }
 0x223   : > { %s1749_s19 = smov %s1741_s12  ;;  %27 = sbr.rel (!%p25_p0) target bundleno = 16 (0x10), region = 131 }
 0x225   : > { %s1752_s23 = smov %s1743_s14 }
 0x22a   :  { %680 = vsyncpa [#allocation5], 1 }
 0x22b   :  { %682 = vsyncpa [#allocation5 + $0x1], 1 }
 0x22c   :  { %683 = vsyncpa [#allocation8], 1 }
 0x22d   :  { %685 = vsyncpa [#allocation8 + $0x1], 1 }
 0x22e   :  { %686 = vsyncpa [#allocation6], 1 }
 0x22f   :  { %688 = vsyncpa [#allocation6 + $0x1], 1 }
 0x230   :  { %689 = vsyncpa [#allocation12], 1 }
 0x231   :  { %691 = vsyncpa [#allocation12 + $0x1], 1 }

</bundles_post_ra>
